<compile_context>
chip_gen: v6e
topology: v6e:2x2x1
jax: 0.10.0
libtpu: 0.0.40
codegen_flags: <defaults>
</compile_context>

<pallas_src>
import functools

import jax
import jax.numpy as jnp
from jax.experimental import pallas as pl
from jax.experimental.pallas import tpu as pltpu


# ---------------------------------------------------------------------------
# Per-generation VMEM budgeting
# ---------------------------------------------------------------------------
def _vmem_limit_bytes() -> int:
    """Scoped-VMEM limit: ~104 MiB on v5e/v6e (128 MiB physical); ~80% of
    physical on v7x (64 MiB) so Mosaic keeps headroom for internal scratch;
    conservative 48 MiB when the query is unavailable."""
    try:
        cap = int(pltpu.get_tpu_info().vmem_capacity_bytes)
    except Exception:
        return 48 * 1024 * 1024
    if cap >= 96 * 1024 * 1024:          # v5e / v6e
        return 104 * 1024 * 1024
    return max(32 * 1024 * 1024, int(cap * 0.8))   # v7x: leave headroom


def _largest_dividing_multiple(n: int, base: int, cap: int) -> int:
    """Largest multiple of `base` that divides n and is <= cap (n % base == 0)."""
    t = min(n, cap)
    t -= t % base
    while t >= base:
        if n % t == 0:
            return t
        t -= base
    return base


def _row_tile(rows: int, desired: int) -> int:
    """Row tile <= desired; prefer a multiple-of-8 exact divisor of rows."""
    if rows <= desired:
        return rows
    t = max(8, (desired // 8) * 8)
    for cand in range(t, 7, -8):
        if rows % cand == 0:
            return cand
    return t  # ragged last block is masked by Pallas


def _choose_fused_tiles(rows: int, d: int, itemsize: int, budget: int):
    """Return (tm, tn, tk); tk == d means the full-K (no reduction axis) path."""
    if d % 128 == 0:
        tn = _largest_dividing_multiple(d, 128, 512)   # lane-dense output stores
    else:
        # TODO(synk): pad D to a multiple of 128 in the wrapper; non-128 widths
        # force masked vst.msk partial stores.
        tn = d

    # Full-K blocks, double-buffered: 2*(tm*d [x] + d*tn [w] + tn [b] + tm*tn [out])
    avail = budget // (2 * itemsize)
    tm_full = (avail - d * tn - tn) // max(d + tn, 1)
    if tm_full >= 128 or tm_full >= rows:
        tm = _row_tile(rows, min(max(int(tm_full), 8), 1024))
        # Keep >= 2 blocks along a parallel axis when possible (v7x has 2 TCs).
        if rows > 8 and pl.cdiv(rows, tm) * pl.cdiv(d, tn) < 2:
            tm = _row_tile(rows, max(8, ((rows // 2 + 7) // 8) * 8))
        return tm, tn, d

    # Large D: K-tile with an f32 accumulator so blocks fit v7x's 64 MiB VMEM.
    tk = _largest_dividing_multiple(d, 128, 512)
    denom = 2 * itemsize * (tk + 2 * tn) + 4 * tn      # x, w, out, x_res (x2) + acc
    tm_k = (budget - 2 * itemsize * (tk * tn + tn)) // max(denom, 1)
    tm = _row_tile(rows, min(max(int(tm_k), 8), 1024))
    return tm, tn, tk


def _choose_add_tiles(rows: int, d: int, itemsize: int, block_bytes: int):
    """~block_bytes per input block for the HBM-bandwidth-bound residual add."""
    if d % 128 == 0 and d * itemsize * 8 > block_bytes:
        # Wide D: tile the lane dimension too so blocks fit the byte budget.
        tn = _largest_dividing_multiple(d, 128, max(128, block_bytes // (8 * itemsize)))
    else:
        tn = d
    tm = _row_tile(rows, max(8, block_bytes // max(tn * itemsize, 1)))
    return tm, tn


# ---------------------------------------------------------------------------
# Pallas kernels
# ---------------------------------------------------------------------------
def _fused_fullk_kernel(x_ref, w_ref, b_ref, o_ref, *, tn, col_axis):
    """o[:, jtile] = gelu(x @ w[:, jtile] + b[jtile]) + x[:, jtile].

    x_ref holds the full-K (tm, D) activation block; the residual slice is
    read from that already-resident block (no second HBM stream of x)."""
    j = pl.program_id(col_axis)
    x = x_ref[...]                                                 # native dtype
    h = jnp.dot(x, w_ref[...], preferred_element_type=jnp.float32)  # MXU, f32 acc
    h = h + b_ref[...].astype(jnp.float32)
    # NOTE: tanh-approx GELU (torch.nn.GELU defaults to exact erf); the
    # Residual spec itself has no GELU -- this is only the representative fn.
    h = jax.nn.gelu(h)
    hint = 128 if tn % 128 == 0 else (8 if tn % 8 == 0 else 1)
    col = pl.multiple_of(j * tn, hint)                             # aligned load
    x_res = x_ref[:, pl.ds(col, tn)].astype(jnp.float32)
    o_ref[...] = (h + x_res).astype(o_ref.dtype)


def _fused_ktiled_kernel(x_ref, w_ref, b_ref, xres_ref, o_ref, acc_ref):
    """K-tiled variant: f32 VMEM accumulator, init/finalize via pl.when."""
    k = pl.program_id(2)

    @pl.when(k == 0)
    def _():
        acc_ref[...] = jnp.zeros_like(acc_ref)

    acc_ref[...] += jnp.dot(x_ref[...], w_ref[...],
                            preferred_element_type=jnp.float32)

    @pl.when(k == pl.num_programs(2) - 1)
    def _():
        h = acc_ref[...] + b_ref[...].astype(jnp.float32)
        h = jax.nn.gelu(h)
        o_ref[...] = (h + xres_ref[...].astype(jnp.float32)).astype(o_ref.dtype)


def _residual_add_kernel(fx_ref, x_ref, o_ref):
    """Generic Residual body: o = fn(x) + x  (fn(x) precomputed)."""
    o_ref[...] = fx_ref[...] + x_ref[...]


# ---------------------------------------------------------------------------
# Wrappers
# ---------------------------------------------------------------------------
def fused_dense_residual(x, w, b, *, tiles=None):
    """gelu(x @ w + b) + x with the whole hot path in one Pallas kernel.

    x: [B, N, D], w: [D, D], b: [D].  `tiles=(tm, tn, tk)` overrides the
    byte-budgeted choice (tk < D selects the K-tiled accumulator path)."""
    B, N, D = x.shape
    rows = B * N
    itemsize = jnp.dtype(x.dtype).itemsize
    vmem_limit = _vmem_limit_bytes()
    if tiles is not None:
        tm, tn, tk = tiles
    else:
        tm, tn, tk = _choose_fused_tiles(rows, D, itemsize, int(vmem_limit * 0.75))

    x2 = x.reshape(rows, D)
    b2 = b.reshape(1, D)
    n_i = pl.cdiv(rows, tm)
    n_j = pl.cdiv(D, tn)

    if tk >= D:
        # ---- full-K path: residual comes from the resident x block. ----
        # Keep the LARGER operand stationary across the inner grid sweep so it
        # is DMA'd from HBM only once (weight-stationary when D >= rows).
        weight_stationary = D >= rows
        if weight_stationary:
            grid = (n_j, n_i)
            in_specs = [
                pl.BlockSpec((tm, D), lambda j, i: (i, 0)),
                pl.BlockSpec((D, tn), lambda j, i: (0, j)),  # constant over inner i
                pl.BlockSpec((1, tn), lambda j, i: (0, j)),
            ]
            out_spec = pl.BlockSpec((tm, tn), lambda j, i: (i, j))
            col_axis = 0
        else:
            grid = (n_i, n_j)
            in_specs = [
                pl.BlockSpec((tm, D), lambda i, j: (i, 0)),  # constant over inner j
                pl.BlockSpec((D, tn), lambda i, j: (0, j)),
                pl.BlockSpec((1, tn), lambda i, j: (0, j)),
            ]
            out_spec = pl.BlockSpec((tm, tn), lambda i, j: (i, j))
            col_axis = 1
        kernel = functools.partial(_fused_fullk_kernel, tn=tn, col_axis=col_axis)
        out = pl.pallas_call(
            kernel,
            out_shape=jax.ShapeDtypeStruct((rows, D), x.dtype),
            grid_spec=pltpu.PrefetchScalarGridSpec(
                num_scalar_prefetch=0, grid=grid,
                in_specs=in_specs, out_specs=out_spec),
            compiler_params=pltpu.CompilerParams(
                dimension_semantics=("parallel", "parallel"),
                vmem_limit_bytes=vmem_limit),
        )(x2, w, b2)
    else:
        # ---- K-tiled path (large D): f32 accumulator, K axis "arbitrary". ----
        n_k = pl.cdiv(D, tk)
        out = pl.pallas_call(
            _fused_ktiled_kernel,
            out_shape=jax.ShapeDtypeStruct((rows, D), x.dtype),
            grid_spec=pltpu.PrefetchScalarGridSpec(
                num_scalar_prefetch=0, grid=(n_i, n_j, n_k),
                in_specs=[
                    pl.BlockSpec((tm, tk), lambda i, j, k: (i, k)),
                    pl.BlockSpec((tk, tn), lambda i, j, k: (k, j)),
                    pl.BlockSpec((1, tn), lambda i, j, k: (0, j)),
                    pl.BlockSpec((tm, tn), lambda i, j, k: (i, j)),  # residual x
                ],
                out_specs=pl.BlockSpec((tm, tn), lambda i, j, k: (i, j)),
                scratch_shapes=[pltpu.VMEM((tm, tn), jnp.float32)]),
            compiler_params=pltpu.CompilerParams(
                dimension_semantics=("parallel", "parallel", "arbitrary"),
                vmem_limit_bytes=vmem_limit),
        )(x2, w, b2, x2)
    return out.reshape(B, N, D)


def pallas_residual_add(fx, x, *, block_bytes=4 * 1024 * 1024):
    """Generic `fn(x) + x` as a Pallas kernel; fx's buffer is reused for out.

    NOTE: callers must not reuse fx afterwards (its buffer is donated)."""
    assert fx.shape == x.shape and fx.dtype == x.dtype
    orig_shape = x.shape
    D = int(orig_shape[-1])
    rows = int(x.size // D)
    itemsize = jnp.dtype(x.dtype).itemsize
    tm, tn = _choose_add_tiles(rows, D, itemsize, block_bytes)
    vmem_limit = _vmem_limit_bytes()

    fx2 = fx.reshape(rows, D)
    x2 = x.reshape(rows, D)

    out = pl.pallas_call(
        _residual_add_kernel,
        out_shape=jax.ShapeDtypeStruct((rows, D), x.dtype),
        grid_spec=pltpu.PrefetchScalarGridSpec(
            num_scalar_prefetch=0,
            grid=(pl.cdiv(rows, tm), pl.cdiv(D, tn)),
            in_specs=[
                pl.BlockSpec((tm, tn), lambda i, j: (i, j)),
                pl.BlockSpec((tm, tn), lambda i, j: (i, j)),
            ],
            out_specs=pl.BlockSpec((tm, tn), lambda i, j: (i, j)),
        ),
        compiler_params=pltpu.CompilerParams(
            dimension_semantics=("parallel", "parallel"),
            vmem_limit_bytes=vmem_limit),
        input_output_aliases={0: 0},   # fn(x)'s buffer becomes the output buffer
    )(fx2, x2)
    return out.reshape(orig_shape)


class Residual:
    """JAX/Pallas equivalent of the PyTorch Residual module: fn(x) + x.

    pallas_add=True runs the residual add in a Pallas kernel (the right choice
    when fn(x) is already materialized, e.g. fn is itself a pallas_call).  For
    a plain-JAX fn, pallas_add=False lets XLA fuse the add into fn's epilogue
    and avoids one HBM round-trip of fn(x)."""

    def __init__(self, fn, pallas_add=True):
        self.fn = fn
        self.pallas_add = pallas_add

    def __call__(self, x, **kwargs):
        fx = self.fn(x, **kwargs)
        if self.pallas_add:
            return pallas_residual_add(fx, x)
        return fx + x


# ---------------------------------------------------------------------------
# Demo / correctness check
# ---------------------------------------------------------------------------
if __name__ == "__main__":
    key = jax.random.PRNGKey(0)
    k_x, k_w, k_b, k_x2, k_w2, k_b2 = jax.random.split(key, 6)

    def fn_ref(z, w_, b_):
        return jax.nn.gelu(jnp.dot(z, w_) + b_)

    # ---- Path 1: fused dense+GELU+residual (full-K, weight-stationary grid).
    B, N, D = 2, 8, 128                    # rows=16, hidden=128 (lane-dense)
    x = jax.random.normal(k_x, (B, N, D), dtype=jnp.float32)
    w = jax.random.normal(k_w, (D, D), dtype=jnp.float32) * 0.05
    b = jax.random.normal(k_b, (D,), dtype=jnp.float32) * 0.01

    y_fused = jax.jit(fused_dense_residual)(x, w, b)
    jax.block_until_ready(y_fused)
    y_ref = fn_ref(x, w, b) + x
    assert y_fused.shape == x.shape and y_fused.dtype == x.dtype
    assert jnp.allclose(y_fused, y_ref, atol=1e-2, rtol=1e-2)

    # ---- Path 2: K-tiled accumulator variant (forced small tiles, D=256).
    D2 = 256
    x2 = jax.random.normal(k_x2, (B, N, D2), dtype=jnp.float32)
    w2 = jax.random.normal(k_w2, (D2, D2), dtype=jnp.float32) * 0.05
    b2 = jax.random.normal(k_b2, (D2,), dtype=jnp.float32) * 0.01
    y_k = jax.jit(functools.partial(fused_dense_residual,
                                    tiles=(8, 128, 128)))(x2, w2, b2)
    jax.block_until_ready(y_k)
    y_ref2 = fn_ref(x2, w2, b2) + x2
    assert y_k.shape == x2.shape and y_k.dtype == x2.dtype
    assert jnp.allclose(y_k, y_ref2, atol=1e-2, rtol=1e-2)

    # ---- Path 3: generic Residual wrapper (Pallas residual add).
    residual = Residual(lambda z: jax.nn.gelu(jnp.dot(z, w) + b))
    y_wrap = jax.jit(residual.__call__)(x)
    jax.block_until_ready(y_wrap)
    assert y_wrap.shape == x.shape and y_wrap.dtype == x.dtype
    assert jnp.allclose(y_wrap, y_ref, atol=1e-2, rtol=1e-2)

    print("KERNEL_OK")
</pallas_src>

<mosaic_0001>
module attributes {stable_mosaic.version = 11 : i64} {
  func.func @_fused_fullk_kernel(%arg0: i32, %arg1: i32, %arg2: memref<8x128xf32, #tpu.memory_space<vmem>>, %arg3: memref<128x128xf32, #tpu.memory_space<vmem>>, %arg4: memref<1x128xf32, #tpu.memory_space<vmem>>, %arg5: memref<8x128xf32, #tpu.memory_space<vmem>>) attributes {dimension_semantics = [#tpu.dimension_semantics<parallel>, #tpu.dimension_semantics<parallel>], iteration_bounds = array<i64: 1, 2>, scalar_prefetch = 0 : i64, scratch_operands = 0 : i64, tpu.core_type = #tpu.core_type<tc>, window_params = [{transform_indices = @transform_0, window_bounds = array<i64: 8, 128>}, {transform_indices = @transform_1, window_bounds = array<i64: 128, 128>}, {transform_indices = @transform_2, window_bounds = array<i64: 1, 128>}, {transform_indices = @transform_3, window_bounds = array<i64: 8, 128>}]} {
    %c0 = arith.constant 0 : index
    %c0_0 = arith.constant 0 : index
    %0 = vector.load %arg2[%c0, %c0_0] : memref<8x128xf32, #tpu.memory_space<vmem>>, vector<8x128xf32>
    %c0_1 = arith.constant 0 : index
    %c0_2 = arith.constant 0 : index
    %1 = vector.load %arg3[%c0_1, %c0_2] : memref<128x128xf32, #tpu.memory_space<vmem>>, vector<128x128xf32>
    %cst = arith.constant dense<0.000000e+00> : vector<8x128xf32>
    %2 = tpu.matmul %0, %1, %cst {dimension_numbers = #tpu.dot_dimension_numbers<[1], [0], [0], [1], [0, 0, 1, 1], [], []>} : vector<8x128xf32>, vector<128x128xf32>, vector<8x128xf32> -> vector<8x128xf32>
    %c0_3 = arith.constant 0 : index
    %c0_4 = arith.constant 0 : index
    %3 = vector.load %arg4[%c0_3, %c0_4] : memref<1x128xf32, #tpu.memory_space<vmem>>, vector<1x128xf32>
    %4 = vector.broadcast %3 : vector<1x128xf32> to vector<8x128xf32>
    %5 = arith.addf %2, %4 : vector<8x128xf32>
    %6 = arith.mulf %5, %5 : vector<8x128xf32>
    %7 = arith.mulf %5, %6 : vector<8x128xf32>
    %cst_5 = arith.constant 4.471500e-02 : f32
    %8 = vector.broadcast %cst_5 : f32 to vector<8x128xf32>
    %9 = arith.mulf %8, %7 : vector<8x128xf32>
    %10 = arith.addf %5, %9 : vector<8x128xf32>
    %cst_6 = arith.constant 0.797884583 : f32
    %11 = vector.broadcast %cst_6 : f32 to vector<8x128xf32>
    %12 = arith.mulf %11, %10 : vector<8x128xf32>
    %13 = math.tanh %12 : vector<8x128xf32>
    %cst_7 = arith.constant 1.000000e+00 : f32
    %14 = vector.broadcast %cst_7 : f32 to vector<8x128xf32>
    %15 = arith.addf %14, %13 : vector<8x128xf32>
    %cst_8 = arith.constant 5.000000e-01 : f32
    %16 = vector.broadcast %cst_8 : f32 to vector<8x128xf32>
    %17 = arith.mulf %16, %15 : vector<8x128xf32>
    %18 = arith.mulf %5, %17 : vector<8x128xf32>
    %c128_i32 = arith.constant 128 : i32
    %19 = arith.muli %arg0, %c128_i32 : i32
    %20 = tpu.assume_multiple %19, 128 : i32
    %c0_9 = arith.constant 0 : index
    %21 = arith.index_cast %20 : i32 to index
    %22 = vector.load %arg2[%c0_9, %21] : memref<8x128xf32, #tpu.memory_space<vmem>>, vector<8x128xf32>
    %23 = arith.addf %18, %22 : vector<8x128xf32>
    %c0_10 = arith.constant 0 : index
    %c0_11 = arith.constant 0 : index
    %24 = vector.load %arg5[%c0_10, %c0_11] : memref<8x128xf32, #tpu.memory_space<vmem>>, vector<8x128xf32>
    tpu.vector_store %arg5[%c0_10, %c0_11], %23 {strides = array<i32>} : memref<8x128xf32, #tpu.memory_space<vmem>>, vector<8x128xf32>,
    return
  }
  func.func @transform_0(%arg0: i32, %arg1: i32) -> (i32, i32) {
    %c0_i32 = arith.constant 0 : i32
    %c0_i32_0 = arith.constant 0 : i32
    return %arg1, %c0_i32 : i32, i32
  }
  func.func @transform_1(%arg0: i32, %arg1: i32) -> (i32, i32) {
    %c0_i32 = arith.constant 0 : i32
    %c0_i32_0 = arith.constant 0 : i32
    return %c0_i32, %arg0 : i32, i32
  }
  func.func @transform_2(%arg0: i32, %arg1: i32) -> (i32, i32) {
    %c0_i32 = arith.constant 0 : i32
    %c0_i32_0 = arith.constant 0 : i32
    return %c0_i32, %arg0 : i32, i32
  }
  func.func @transform_3(%arg0: i32, %arg1: i32) -> (i32, i32) {
    %c0_i32 = arith.constant 0 : i32
    return %arg1, %arg0 : i32, i32
  }
}

</mosaic_0001>

<bundles_post_ra>
// kernel: fused_dense_residual.1
= control target key start
LH: loop header
LB: loop body
LE: loop exit
PB: predicated region body
PF: predicated region fallthrough
CT: control target
= control target key end

     0   :  { %8 = vsyncpa [#allocation3], 0  ;;  %s957_s0 = inlined_call_operand.hbm [shape: f32[16,128], index: 0, kind: input, shape index: {}]   ;;  %s958_s1 = inlined_call_operand.hbm [shape: f32[128,128], index: 1, kind: input, shape index: {}]   ;;  %s959_s2 = inlined_call_operand.vmem [shape: f32[1,128], index: 2, kind: input, shape index: {}]   ;;  %s960_s3 = inlined_call_operand.hbm [shape: f32[16,128], index: 3, kind: output, shape index: {}]  }
   0x1   :  { %10 = vsyncpa [#allocation3 + $0x1], 0 }
   0x2   :  { %11 = vsyncpa [#allocation6], 0 }
   0x3   :  { %12 = vsyncpa [#allocation4], 0 }
   0x4   :  { %14 = vsyncpa [#allocation4 + $0x1], 0  ;;  %s780_s12 = smov 0   ;;  %s782_s13 = smov 0  }
   0x5   :  { %s784_s14 = smov 0   ;;  %s786_s15 = smov 0  }
   0x6   :  { %s788_s16 = smov 0   ;;  %s790_s17 = smov 0  }
   0x7 LB: > { %s465_s18 = sadd.s32 4294967295, %s751_s17   ;;  %s466_s19 = sadd.s32 4294967294, %s751_s17   ;;  %s751_s17 = sphi %s790_s17, %s20_s17   ;;  %s747_s16 = sphi %s788_s16, %s978_s16   ;;  %s743_s15 = sphi %s786_s15, %s977_s15   ;;  %s739_s14 = sphi %s784_s14, %s976_s14   ;;  %s735_s13 = sphi %s782_s13, %s975_s13   ;;  %s731_s12 = sphi %s780_s12, %s974_s12  }
   0x8   : > { %p52_p0 = scmp.ne.s32.totalorder %s735_s13, %s731_s12  ;;  %p814_p1 = scmp.eq.s32.totalorder %s465_s18, 0 }
   0x9   : > { %p818_p2 = scmp.eq.s32.totalorder %s465_s18, 1  ;;  %p136_p3 = scmp.eq.s32.totalorder %s466_s19, 1 }
   0xa   : > { %p824_p4 = por %p814_p1, %p52_p0  ;;  %p467_p5 = scmp.ge.s32.totalorder %s751_s17, 1 }
   0xb   : > { %p829_p6 = por %p136_p3, %p52_p0  ;;  %p143_p7 = scmp.lt.s32.totalorder %s751_s17, 3 }
   0xc   : > { %s964_s22 = scalar_select %p824_p4, 1, 0 }
   0xd   : > { %s965_s23 = scalar_select %p829_p6, 1, 0 }
   0xe   : > { %p834_p8 = pnand %p467_p5, %p143_p7  ;;  %s753_s25 = smov [#allocation5]  }
   0xf   : > { %s157_s26 = sshll.u32 %s753_s25, 4  ;;  %s29_s28 = sadd.s32 1, %s747_s16  ;;  %s158_s26 = int_to_ptr.vmem [resolvable:$true] %s157_s26 }
  0x10   : > { %p542_p9 = pneg %p834_p8  ;;  %s624_s29 = scalar_lea.vmem %s158_s26, 2048 }
  0x11   : > { %p625_p13 = scmp.ne.s32.totalorder %s158_s26, %s624_s29  ;;  %p632_p5 = scmp.lt.s32.totalorder %s158_s26, %s158_s26 }
  0x12   : > { %p843_p11 = pnand %p542_p9, %p814_p1  ;;  %p633_p7 = scmp.lt.s32.totalorder %s624_s29, %s624_s29 }
  0x14   : > { %p615_p12 = pneg %p843_p11  ;;  %p634_p6 = por %p633_p7, %p632_p5 }
  0x16   : > { %p627_p0 = pnand %p625_p13, %p615_p12 }
  0x18   : > { %p628_p3 = pneg %p627_p0 }
  0x1a   : > { %p635_p4 = pnand %p634_p6, %p628_p3 }
  0x1c   : > { %638 = shalt.err (!%p635_p4)
}
  0x1d   : > { %s754_s30 = smov 128   ;;  %s755_s4 = smov 8  }
  0x1e   : > { %545 = dma.hbm_to_vmem [thread:$0]  (!%p843_p11), %s958_s1, 2048, %s158_s26, [#allocation6], %s754_s30, %s754_s30, %s755_s4  }
  0x1f   : > { %p30_p6 = scmp.ge.s32.totalorder %s29_s28, 2  ;;  %s39_s7 = sadd.s32 1, %s739_s14 }
  0x20   : > { %p46_p4 = scmp.ne.s32.totalorder %s739_s14, %s735_s13  ;;  %p47_p9 = scmp.eq.s32.totalorder %s751_s17, 0 }
  0x21   : > { %s980_s28 = smov (%p30_p6, %s29_s28), 0  ;;  %p555_p0 = scmp.lt.s32.totalorder %s751_s17, 2 }
  0x22   : > { %p861_p12 = por %p47_p9, %p46_p4  ;;  %p867_p13 = por %p818_p2, %p46_p4 }
  0x23   : > { %s36_s10 = ssub.s32 %s747_s16, %s980_s28  ;;  %s177_s11 = sand.u32 1, %s739_s14  }
  0x24   : > { %p37_p11 = scmp.eq.s32.totalorder %s36_s10, 0  ;;  %s471_s18 = sshll.u32 %s177_s11, 3 }
  0x25   : > { %s472_s25 = sshll.u32 %s747_s16, 7  ;;  %s181_s30 = scalar_lea.vmem [#allocation2], %s471_s18 }
  0x26   : > { %s876_s19 = scalar_select %p37_p11, %s739_s14, %s39_s7  }
  0x27   : > { %s186_s29 = scalar_lea.hbm %s957_s0, %s472_s25  ;;  %s188_s4 = sshll.u32 %s181_s30, 4  ;;  %s189_s4 = int_to_ptr.vmem [resolvable:$true] %s188_s4 }
  0x28   : > { %p884_p2 = pnand %p555_p0, %p861_p12  ;;  %s178_s5 = scalar_lea.sflag [#allocation3], %s177_s11 }
  0x29   : > { %s652_s6 = scalar_lea.vmem %s189_s4, 128  ;;  %s756_s7 = smov [#allocation2]  }
  0x2a   : > { %p641_p3 = pneg %p884_p2  ;;  %p653_p5 = scmp.ne.s32.totalorder %s189_s4, %s652_s6 }
  0x2b   : > { %s657_s10 = sshll.u32 %s756_s7, 4  ;;  %s658_s10 = int_to_ptr.vmem [resolvable:$false] %s657_s10 }
  0x2c   : > { %p655_p7 = pnand %p653_p5, %p641_p3  ;;  %s659_s25 = scalar_lea.vmem %s658_s10, 256 }
  0x2d   : > { %p660_p4 = scmp.lt.s32.totalorder %s189_s4, %s658_s10  ;;  %p661_p9 = scmp.lt.s32.totalorder %s659_s25, %s652_s6 }
  0x2e   : > { %p656_p6 = pneg %p655_p7 }
  0x2f   : > { %p662_p11 = por %p661_p9, %p660_p4 }
  0x31   : > { %p663_p10 = pnand %p662_p11, %p656_p6 }
  0x33   : > { %666 = shalt.err (!%p663_p10)
}
  0x34   : > { %549 = dma.hbm_to_vmem [thread:$0]  (!%p884_p2), %s186_s29, 128, %s189_s4, %s178_s5  }
  0x35   : > { %197 = sbr.rel (%p834_p8) target bundleno = 334 (0x14e), region = 32  ;;  %s895_s8 = sand.u32 (!%p834_p8), 1, %s735_s13  }
  0x36   : > { %s474_s11 = sshll.u32 (!%p834_p8), %s895_s8, 3  ;;  %s200_s18 = scalar_lea.sflag (!%p834_p8), [#allocation3], %s895_s8 }
  0x37   : > { %s901_s26 = scalar_lea.vmem (!%p834_p8), [#allocation2], %s474_s11  ;;  %p971_p12 = scmp.ne.s32.totalorder (!%p834_p8), %s964_s22, 0 }
  0x3a   : > { %718 = dma.done.wait (%p971_p12), %s200_s18, 128  }
  0x3b   : > { %720 = vsyncadd (%p971_p12), %s200_s18, 4294967168 }
  0x3c   : > { %722 = dma.done.wait (%p814_p1), [#allocation6], 2048  }
  0x3d   : > { %724 = vsyncadd (%p814_p1), [#allocation6], 4294965248  ;;  %v757_v0 = vmov 0.0   ;;  %vm758_vm0 = vmmov 0   ;;  %v252_v1 = vld [vmem:[#allocation5 + $0x78] sm:$0xff]  ;;  %v251_v2 = vld [vmem:[#allocation5 + $0x70] sm:$0xff] }
  0x3e   : > { %499 = vmatprep.subr.mxu0 %v757_v0  ;;  %531 = vmatprep.mubr.msk.f32.mxu0 %vm758_vm0, %v757_v0  ;;  %v250_v3 = vld [vmem:[#allocation5 + $0x68] sm:$0xff]  ;;  %v249_v4 = vld [vmem:[#allocation5 + $0x60] sm:$0xff]  ;;  %v248_v5 = vld [vmem:[#allocation5 + $0x58] sm:$0xff]  ;;  %s479_s24 = sshll.u32 %s743_s15, 7  ;;  %s232_s27 = scalar_lea.vmem [#allocation7], %s474_s11 }
  0x3f   : > { %500 = vmatpush3.msra.mxu0 %v252_v1  ;;  %v247_v6 = vld [vmem:[#allocation5 + $0x50] sm:$0xff]  ;;  %v246_v7 = vld [vmem:[#allocation5 + $0x48] sm:$0xff]  ;;  %v245_v8 = vld [vmem:[#allocation5 + $0x40] sm:$0xff]  ;;  %s361_s29 = sshll.u32 %s232_s27, 4  ;;  %s359_s21 = scalar_lea.hbm %s960_s3, %s479_s24  ;;  %s362_s29 = int_to_ptr.vmem [resolvable:$true] %s361_s29 }
  0x40   : > { %501 = vmatprep.subr.mxu0 %v757_v0  ;;  %v244_v9 = vld [vmem:[#allocation5 + $0x38] sm:$0xff]  ;;  %v243_v10 = vld [vmem:[#allocation5 + $0x30] sm:$0xff]  ;;  %v242_v11 = vld [vmem:[#allocation5 + $0x28] sm:$0xff]  ;;  %s347_s5 = scalar_lea.sflag [#allocation4], %s895_s8  ;;  %s667_s6 = scalar_lea.vmem %s362_s29, 128 }
  0x41   : > { %502 = vmatpush3.msra.mxu0 %v251_v2  ;;  %v241_v12 = vld [vmem:[#allocation5 + $0x20] sm:$0xff]  ;;  %v240_v13 = vld [vmem:[#allocation5 + $0x18] sm:$0xff]  ;;  %v239_v14 = vld [vmem:[#allocation5 + $0x10] sm:$0xff]  ;;  %p668_p1 = scmp.ne.s32.totalorder %s362_s29, %s667_s6  ;;  %s759_s7 = smov [#allocation7]  }
  0x42   : > { %503 = vmatprep.subr.mxu0 %v757_v0  ;;  %v238_v15 = vld [vmem:[#allocation5 + $0x8] sm:$0xff]  ;;  %v237_v16 = vld [vmem:[#allocation5] sm:$0xff]  ;;  %v236_v17 = vld [vmem:[%s901_s26] sm:$0xff]  ;;  %s671_s10 = sshll.u32 %s759_s7, 4  ;;  %s672_s10 = int_to_ptr.vmem [resolvable:$false] %s671_s10 }
  0x43   : > { %504 = vmatpush3.msra.mxu0 %v250_v3  ;;  %v477_v18 = vld [vmem:[%s959_s2] ss:$0 sm:$0xff]  ;;  %p669_p8 = pnand %p668_p1, %p867_p13  ;;  %s673_s15 = scalar_lea.vmem %s672_s10, 256 }
  0x44   : > { %505 = vmatprep.subr.mxu0 %v757_v0  ;;  %p674_p0 = scmp.lt.s32.totalorder %s362_s29, %s672_s10  ;;  %p675_p2 = scmp.lt.s32.totalorder %s673_s15, %s667_s6 }
  0x45   : > { %506 = vmatpush3.msra.mxu0 %v249_v4  ;;  %p670_p10 = pneg %p669_p8 }
  0x46   : > { %507 = vmatprep.subr.mxu0 %v757_v0  ;;  %p676_p3 = por %p675_p2, %p674_p0 }
  0x47   : > { %508 = vmatpush3.msra.mxu0 %v248_v5 }
  0x48   : > { %509 = vmatprep.subr.mxu0 %v757_v0  ;;  %p677_p5 = pnand %p676_p3, %p670_p10 }
  0x49   : > { %510 = vmatpush3.msra.mxu0 %v247_v6 }
  0x4a   : > { %511 = vmatprep.subr.mxu0 %v757_v0 }
  0x4b   : > { %512 = vmatpush3.msra.mxu0 %v246_v7 }
  0x4c   : > { %513 = vmatprep.subr.mxu0 %v757_v0 }
  0x4d   : > { %514 = vmatpush3.msra.mxu0 %v245_v8 }
  0x4e   : > { %515 = vmatprep.subr.mxu0 %v757_v0 }
  0x4f   : > { %516 = vmatpush3.msra.mxu0 %v244_v9 }
  0x50   : > { %517 = vmatprep.subr.mxu0 %v757_v0 }
  0x51   : > { %518 = vmatpush3.msra.mxu0 %v243_v10 }
  0x52   : > { %519 = vmatprep.subr.mxu0 %v757_v0 }
  0x53   : > { %520 = vmatpush3.msra.mxu0 %v242_v11 }
  0x54   : > { %521 = vmatprep.subr.mxu0 %v757_v0 }
  0x55   : > { %522 = vmatpush3.msra.mxu0 %v241_v12 }
  0x56   : > { %523 = vmatprep.subr.mxu0 %v757_v0 }
  0x57   : > { %524 = vmatpush3.msra.mxu0 %v240_v13 }
  0x58   : > { %525 = vmatprep.subr.mxu0 %v757_v0 }
  0x59   : > { %526 = vmatpush3.msra.mxu0 %v239_v14 }
  0x5a   : > { %527 = vmatprep.subr.mxu0 %v757_v0 }
  0x5b   : > { %528 = vmatpush3.msra.mxu0 %v238_v15 }
  0x5c   : > { %529 = vmatprep.subr.mxu0 %v757_v0 }
  0x5d   : > { %530 = vmatpush3.msra.mxu0 %v237_v16 }
  0x5e   : > { %532 = vmatmul.mubr.f32.vlgmr.msra.gmra.mxu0 %v236_v17 }
 0x11e   : > { %v326_v19 = vpop.f32.mrf.mxu0 }
 0x11f   : > { %v327_v20 = vadd.f32 %v477_v18, %v326_v19 }
 0x120   : > { %v533_v21 = vpop.f32.mrf.mxu0 }
 0x121   : > { %v330_v22 = vmul.f32 %v327_v20, %v327_v20 }
 0x123   : > { %v331_v23 = vmul.f32 %v330_v22, %v327_v20 }
 0x125   : > { %v332_v24 = vmul.f32 0.044715, %v331_v23 }
 0x127   : > { %v333_v25 = vadd.f32 %v332_v24, %v327_v20 }
 0x129   : > { %v334_v26 = vmul.f32 0.7978846, %v333_v25 }
 0x12b   : > { %611 = vtanh.f32 %v334_v26 }
 0x138   : > { %v612_v27 = vpop.eup %611 }
 0x139   : > { %v336_v28 = vadd.f32 1.0, %v612_v27 }
 0x13b   : > { %v337_v29 = vmul.f32 0.5, %v336_v28 }
 0x13d   : > { %v338_v30 = vmul.f32 %v337_v29, %v327_v20 }
 0x13f   : > { %v344_v31 = vadd.f32 %v338_v30, %v236_v17 }
 0x141   : > { %345 = vst [vmem:[%s232_s27] sm:$0xff] %v344_v31 }
 0x142   : > { %680 = shalt.err (!%p677_p5)
}
 0x143   : > { %s681_s25 = scalar_lea.hbm %s359_s21, 128  ;;  %s685_s18 = scalar_lea.hbm %s960_s3, 256 }
 0x144   : > { %p682_p7 = scmp.ne.s32.totalorder %s359_s21, %s681_s25  ;;  %p686_p9 = scmp.lt.s32.totalorder %s359_s21, %s960_s3 }
 0x145   : > { %p687_p11 = scmp.lt.s32.totalorder %s685_s18, %s681_s25 }
 0x146   : > { %p683_p6 = pnand %p682_p7, %p867_p13 }
 0x147   : > { %p688_p12 = por %p687_p11, %p686_p9 }
 0x148   : > { %p684_p4 = pneg %p683_p6 }
 0x14a   : > { %p689_p1 = pnand %p688_p12, %p684_p4 }
 0x14c   : > { %692 = shalt.err (!%p689_p1)
}
 0x14d   : > { %540 = dma.vmem_to_hbm [thread:$0]  (%p867_p13), %s362_s29, 128, %s359_s21, %s347_s5  }
 0x14e PF: > { %s373_s22 = sand.u32 1, %s731_s12   ;;  %p972_p8 = scmp.ne.s32.totalorder %s965_s23, 0 }
 0x14f   : > { %p973_p10 = scmp.ge.s32.totalorder %s751_s17, 2  ;;  %s374_s24 = scalar_lea.sflag [#allocation4], %s373_s22 }
 0x151   : > { %p551_p0 = pnand %p973_p10, %p972_p8 }
 0x153   : > { %p552_p2 = pneg %p551_p0 }
 0x155   : > { %726 = dma.done.wait (%p552_p2), %s374_s24, 128  }
 0x156   : > { %728 = vsyncadd (%p552_p2), %s374_s24, 4294967168  ;;  %s20_s17 = sadd.s32 1, %s751_s17   ;;  %s974_s12 = smov %s735_s13 }
 0x157   : > { %p17_p3 = scmp.ge.s32.totalorder %s20_s17, 4   ;;  %s975_s13 = smov %s739_s14 }
 0x158   : > { %s976_s14 = smov %s876_s19  ;;  %s977_s15 = smov %s747_s16 }
 0x159   : > { %s978_s16 = smov %s980_s28  ;;  %19 = sbr.rel (!%p17_p3) target bundleno = 7 (0x7), region = 86 }
 0x15e   :  { %379 = vsyncpa [#allocation3], 1 }
 0x15f   :  { %381 = vsyncpa [#allocation3 + $0x1], 1 }
 0x160   :  { %382 = vsyncpa [#allocation6], 1 }
 0x161   :  { %383 = vsyncpa [#allocation4], 1 }
 0x162   :  { %385 = vsyncpa [#allocation4 + $0x1], 1 }

</bundles_post_ra>
